<compile_context>
chip_gen: v7x
topology: tpu7x:2x2x1
jax: 0.10.0
libtpu: 0.0.40
codegen_flags: <defaults>
</compile_context>

<pallas_src>
import functools

import jax
import jax.numpy as jnp
from jax.experimental import pallas as pl
from jax.experimental.pallas import tpu as pltpu


def _cdiv(a, b):
    return -(-a // b)


def _round_up(x, m):
    return ((x + m - 1) // m) * m


# ----------------------------------------------------------------------------
# Shared epilogue: mask ragged tail rows, reduce block to one partial sum,
# store it replicated over a full (8, 128) tile (single unmasked vector store).
# ----------------------------------------------------------------------------
def _write_block_sum(out_ref, loss_col, *, n_rows, block_n):
    bn = loss_col.shape[0]
    if n_rows % block_n != 0:
        row_ids = (jax.lax.broadcasted_iota(jnp.int32, (bn, 1), 0)
                   + pl.program_id(0) * block_n)
        loss_col = jnp.where(row_ids < n_rows, loss_col, 0.0)
    total = jnp.sum(loss_col, axis=0, keepdims=True)            # (1, 1) f32
    out_ref[...] = jnp.broadcast_to(total.reshape(1, 1, 1), (1, 8, 128))


# ----------------------------------------------------------------------------
# Kernels (one row-block per grid step -> one partial-sum tile)
# ----------------------------------------------------------------------------
def _ce_kernel_plain(pred_ref, tgt_ref, out_ref, *, n_rows, block_n):
    """label_smooth is None: loss_row = -pred[t] + log(sum(exp(pred + eps)))."""
    eps = jnp.float32(1e-12)
    pred = pred_ref[...].astype(jnp.float32)                    # [bn, C]
    tgt = tgt_ref[...]                                          # [bn, 1] int32
    bn, c = pred.shape
    cls_ids = jax.lax.broadcasted_iota(jnp.int32, (bn, c), 1)
    onehot = cls_ids == tgt
    gathered = jnp.sum(jnp.where(onehot, pred, 0.0), axis=1, keepdims=True)
    # stable logsumexp; exp(pred+eps) = exp(eps)*exp(pred) -> lse + eps exactly
    m = jnp.max(pred, axis=1, keepdims=True)
    lse = m + jnp.log(jnp.sum(jnp.exp(pred - m), axis=1, keepdims=True)) + eps
    loss = lse - gathered                                       # [bn, 1]
    _write_block_sum(out_ref, loss, n_rows=n_rows, block_n=block_n)


def _ce_kernel_smooth(pred_ref, tgt_ref, out_ref, *, n_rows, block_n,
                      label_smooth, class_num):
    """Fused smoothing branch:
         smooth = off + (on - off) * onehot,  off = ls/(C-1),  on = 1 - ls
         sum(smooth * logp) = off * sum(logp) + (on - off) * logp[target]
         sum(logp)    = sum(shifted) - C * logz
         logp[target] = shifted[target] - logz
       (matches the reference clip for label_smooth <= (C-1)/C, i.e. all
       sensible smoothing values)."""
    pred = pred_ref[...].astype(jnp.float32)                    # [bn, C]
    tgt = tgt_ref[...]                                          # [bn, 1] int32
    bn, c = pred.shape
    m = jnp.max(pred, axis=1, keepdims=True)
    shifted = pred - m
    logz = jnp.log(jnp.sum(jnp.exp(shifted), axis=1, keepdims=True))
    cls_ids = jax.lax.broadcasted_iota(jnp.int32, (bn, c), 1)
    onehot = cls_ids == tgt
    sum_shifted = jnp.sum(shifted, axis=1, keepdims=True)
    gathered_shifted = jnp.sum(jnp.where(onehot, shifted, 0.0), axis=1,
                               keepdims=True)
    off = jnp.float32(label_smooth / (class_num - 1))
    on = jnp.float32(1.0 - label_smooth)
    sum_logp = sum_shifted - jnp.float32(c) * logz
    gathered_logp = gathered_shifted - logz
    loss = -(off * sum_logp + (on - off) * gathered_logp)       # [bn, 1]
    _write_block_sum(out_ref, loss, n_rows=n_rows, block_n=block_n)


# ----------------------------------------------------------------------------
# Wrapper
# ----------------------------------------------------------------------------
def ce_loss(pred, target, label_smooth=None, class_num=137, block_n=None):
    """pred: [N, C] float (f32 or bf16), target: [N] int -> scalar f32 loss."""
    n, c = pred.shape
    assert c == class_num, "pred class dim must match class_num"

    itemsize = jnp.dtype(pred.dtype).itemsize
    gran = 8 if itemsize >= 4 else 16            # sublane granularity (packed bf16: 16)

    if block_n is None:
        block_n = 8192                           # amortizes ~0.35us/step overhead
    # v7x megacore: keep >= 2 row blocks when N allows it ("parallel" axis).
    block_n = min(block_n, max(gran, _round_up(_cdiv(n, 2), gran)))
    block_n = max(gran, _round_up(block_n, gran))
    num_blocks = _cdiv(n, block_n)

    tgt = target.astype(jnp.int32).reshape(n, 1)

    # VMEM budget with (8,128) lane padding: pred row -> round_up(C,128) lanes,
    # target row (int32, 1 lane) -> 128 lanes.  x2 for double buffering.
    padded_c = _round_up(c, 128)
    per_row_bytes = padded_c * itemsize + 128 * 4
    vmem_need = 2 * block_n * per_row_bytes + 2 * 8 * 128 * 4 + (2 << 20)
    vmem_limit = int(max(32 << 20, vmem_need))   # explicit; fits all generations

    if label_smooth is None:
        kernel = functools.partial(_ce_kernel_plain, n_rows=n, block_n=block_n)
    else:
        kernel = functools.partial(
            _ce_kernel_smooth, n_rows=n, block_n=block_n,
            label_smooth=float(label_smooth), class_num=int(class_num))

    partials = pl.pallas_call(
        kernel,
        grid=(num_blocks,),
        in_specs=[
            pl.BlockSpec((block_n, c), lambda i: (i, 0)),
            pl.BlockSpec((block_n, 1), lambda i: (i, 0)),
        ],
        out_specs=pl.BlockSpec((1, 8, 128), lambda i: (i, 0, 0)),
        out_shape=jax.ShapeDtypeStruct((num_blocks, 8, 128), jnp.float32),
        compiler_params=pltpu.CompilerParams(
            dimension_semantics=("parallel",),   # megacore split on v7x
            vmem_limit_bytes=vmem_limit,
        ),
    )(pred, tgt)

    # Tiny final reduction over num_blocks partial sums in plain JAX.
    return jnp.sum(partials[:, 0, 0]) / jnp.float32(n)


# ----------------------------------------------------------------------------
# Pure-JAX reference (mirrors the PyTorch forward, including the broadcast bug)
# ----------------------------------------------------------------------------
def ce_loss_ref(pred, target, label_smooth=None, class_num=137):
    eps = 1e-12
    pred = pred.astype(jnp.float32)
    if label_smooth is not None:
        logprobs = jax.nn.log_softmax(pred, axis=1)
        t = jax.nn.one_hot(target, class_num, dtype=jnp.float32)
        t = jnp.clip(t, label_smooth / (class_num - 1), 1.0 - label_smooth)
        loss = -jnp.sum(t * logprobs, axis=1)
        return jnp.mean(loss)
    gathered = jnp.take_along_axis(pred, target[:, None].astype(jnp.int32), axis=1)
    lse = jnp.log(jnp.sum(jnp.exp(pred + eps), axis=1))
    loss = -1.0 * gathered + lse[None, :]    # broadcast to [N, N], as in PyTorch
    return jnp.mean(loss)


if __name__ == "__main__":
    key = jax.random.PRNGKey(0)
    k1, k2 = jax.random.split(key)

    C = 137
    N = 8
    pred = jax.random.normal(k1, (N, C), dtype=jnp.float32)
    target = jax.random.randint(k2, (N,), 0, C, dtype=jnp.int32)

    # branch 1: no label smoothing (module default), single block
    out_plain = jax.block_until_ready(ce_loss(pred, target, None, C))
    ref_plain = ce_loss_ref(pred, target, None, C)
    assert jnp.allclose(out_plain, ref_plain, rtol=1e-4, atol=1e-5), (out_plain, ref_plain)

    # branch 2: label smoothing, single block
    out_smooth = jax.block_until_ready(ce_loss(pred, target, 0.1, C))
    ref_smooth = ce_loss_ref(pred, target, 0.1, C)
    assert jnp.allclose(out_smooth, ref_smooth, rtol=1e-4, atol=1e-5), (out_smooth, ref_smooth)

    # ragged multi-block grid: no input padding, in-kernel tail-row masking
    N2 = 20
    pred2 = jax.random.normal(k1, (N2, C), dtype=jnp.float32)
    target2 = jax.random.randint(k2, (N2,), 0, C, dtype=jnp.int32)

    out2p = jax.block_until_ready(ce_loss(pred2, target2, None, C, block_n=8))
    ref2p = ce_loss_ref(pred2, target2, None, C)
    assert jnp.allclose(out2p, ref2p, rtol=1e-4, atol=1e-5), (out2p, ref2p)

    out2s = jax.block_until_ready(ce_loss(pred2, target2, 0.1, C, block_n=8))
    ref2s = ce_loss_ref(pred2, target2, 0.1, C)
    assert jnp.allclose(out2s, ref2s, rtol=1e-4, atol=1e-5), (out2s, ref2s)

    # default block heuristic (megacore cap -> 2 blocks) on the ragged size
    out2d = jax.block_until_ready(ce_loss(pred2, target2, None, C))
    assert jnp.allclose(out2d, ref2p, rtol=1e-4, atol=1e-5), (out2d, ref2p)

    # bf16 pred (kernel upcasts in-vreg; halves HBM traffic for the pred stream)
    pred_bf16 = pred2.astype(jnp.bfloat16)
    out_bf = jax.block_until_ready(ce_loss(pred_bf16, target2, 0.1, C))
    ref_bf = ce_loss_ref(pred_bf16.astype(jnp.float32), target2, 0.1, C)
    assert jnp.allclose(out_bf, ref_bf, rtol=1e-4, atol=1e-5), (out_bf, ref_bf)

    print("KERNEL_OK")
</pallas_src>

<mosaic_0001>
module attributes {stable_mosaic.version = 11 : i64} {
  func.func @_ce_kernel_plain(%arg0: i32, %arg1: memref<8x137xf32, #tpu.memory_space<vmem>>, %arg2: memref<8x1xi32, #tpu.memory_space<vmem>>, %arg3: memref<1x8x128xf32, #tpu.memory_space<vmem>>) attributes {dimension_semantics = [#tpu.dimension_semantics<parallel>], iteration_bounds = array<i64: 1>, scalar_prefetch = 0 : i64, scratch_operands = 0 : i64, tpu.core_type = #tpu.core_type<tc>, window_params = [{transform_indices = @transform_0, window_bounds = array<i64: 8, 137>}, {transform_indices = @transform_1, window_bounds = array<i64: 8, 1>}, {transform_indices = @transform_2, window_bounds = array<i64: 1, 8, 128>}]} {
    %c0 = arith.constant 0 : index
    %c0_0 = arith.constant 0 : index
    %0 = vector.load %arg1[%c0, %c0_0] : memref<8x137xf32, #tpu.memory_space<vmem>>, vector<8x137xf32>
    %c0_1 = arith.constant 0 : index
    %c0_2 = arith.constant 0 : index
    %1 = vector.load %arg2[%c0_1, %c0_2] : memref<8x1xi32, #tpu.memory_space<vmem>>, vector<8x1xi32>
    %2 = tpu.iota {dimensions = array<i32: 1>} : vector<8x137xi32>
    %3 = vector.broadcast %1 : vector<8x1xi32> to vector<8x137xi32>
    %4 = arith.cmpi eq, %2, %3 : vector<8x137xi32>
    %cst = arith.constant 0.000000e+00 : f32
    %5 = vector.broadcast %cst : f32 to vector<8x137xf32>
    %6 = arith.select %4, %0, %5 : vector<8x137xi1>, vector<8x137xf32>
    %cst_3 = arith.constant dense<0.000000e+00> : vector<8xf32>
    %7 = vector.multi_reduction <add>, %6, %cst_3 [1] : vector<8x137xf32> to vector<8xf32>
    %8 = vector.shape_cast %7 : vector<8xf32> to vector<8x1xf32>
    %cst_4 = arith.constant dense<0xFF800000> : vector<8xf32>
    %9 = vector.multi_reduction <maximumf>, %0, %cst_4 [1] : vector<8x137xf32> to vector<8xf32>
    %10 = vector.shape_cast %9 : vector<8xf32> to vector<8x1xf32>
    %11 = vector.broadcast %10 : vector<8x1xf32> to vector<8x137xf32>
    %12 = arith.subf %0, %11 : vector<8x137xf32>
    %13 = math.exp %12 : vector<8x137xf32>
    %cst_5 = arith.constant dense<0.000000e+00> : vector<8xf32>
    %14 = vector.multi_reduction <add>, %13, %cst_5 [1] : vector<8x137xf32> to vector<8xf32>
    %15 = vector.shape_cast %14 : vector<8xf32> to vector<8x1xf32>
    %16 = math.log %15 : vector<8x1xf32>
    %17 = arith.addf %10, %16 : vector<8x1xf32>
    %cst_6 = arith.constant 9.99999996E-13 : f32
    %18 = vector.broadcast %cst_6 : f32 to vector<8x1xf32>
    %19 = arith.addf %17, %18 : vector<8x1xf32>
    %20 = arith.subf %19, %8 : vector<8x1xf32>
    %cst_7 = arith.constant dense<0.000000e+00> : vector<1xf32>
    %21 = vector.multi_reduction <add>, %20, %cst_7 [0] : vector<8x1xf32> to vector<1xf32>
    %22 = vector.shape_cast %21 : vector<1xf32> to vector<1x1xf32>
    %23 = vector.shape_cast %22 : vector<1x1xf32> to vector<1x1x1xf32>
    %24 = vector.shape_cast %23 : vector<1x1x1xf32> to vector<1x1x1xf32>
    %25 = vector.broadcast %24 : vector<1x1x1xf32> to vector<1x8x128xf32>
    %c0_8 = arith.constant 0 : index
    %c0_9 = arith.constant 0 : index
    %c0_10 = arith.constant 0 : index
    %26 = vector.load %arg3[%c0_8, %c0_9, %c0_10] : memref<1x8x128xf32, #tpu.memory_space<vmem>>, vector<1x8x128xf32>
    tpu.vector_store %arg3[%c0_8, %c0_9, %c0_10], %25 {strides = array<i32>} : memref<1x8x128xf32, #tpu.memory_space<vmem>>, vector<1x8x128xf32>,
    return
  }
  func.func @transform_0(%arg0: i32) -> (i32, i32) {
    %c0_i32 = arith.constant 0 : i32
    %c0_i32_0 = arith.constant 0 : i32
    return %arg0, %c0_i32 : i32, i32
  }
  func.func @transform_1(%arg0: i32) -> (i32, i32) {
    %c0_i32 = arith.constant 0 : i32
    %c0_i32_0 = arith.constant 0 : i32
    return %arg0, %c0_i32 : i32, i32
  }
  func.func @transform_2(%arg0: i32) -> (i32, i32, i32) {
    %c0_i32 = arith.constant 0 : i32
    %c0_i32_0 = arith.constant 0 : i32
    %c0_i32_1 = arith.constant 0 : i32
    return %arg0, %c0_i32, %c0_i32_0 : i32, i32, i32
  }
}

</mosaic_0001>

<bundles_post_ra>
// kernel: tpu_custom_call.1
= control target key start
LH: loop header
LB: loop body
LE: loop exit
PB: predicated region body
PF: predicated region fallthrough
CT: control target
= control target key end

     0   :  { %7 = vsyncpa [#allocation3], 0  ;;  %s189_s0 = inlined_call_operand.hbm [shape: f32[8,137], index: 0, kind: input, shape index: {}]   ;;  %s190_s1 = inlined_call_operand.vmem [shape: s32[8,1], index: 1, kind: input, shape index: {}]   ;;  %s191_s2 = inlined_call_operand.hbm [shape: f32[1,8,128], index: 2, kind: output, shape index: {}]  }
   0x1   :  { %8 = vsyncpa [#allocation4], 0  ;;  %s141_s9 = smov [#allocation2]   ;;  %s93_s13 = scalar_lea.hbm %s189_s0, 256 }
   0x2   :  { %s15_s10 = sshll.u32 %s141_s9, 4  ;;  %p94_p0 = scmp.ne.s32.totalorder %s189_s0, %s93_s13  ;;  %s16_s10 = int_to_ptr.vmem [resolvable:$true] %s15_s10 }
   0x3   :  { %p97_p1 = scmp.lt.u32.totalorder %s93_s13, %s189_s0 }
   0x5   :  { %p99_p2 = pnand %p97_p1, %p94_p0 }
   0x7   :  { %102 = shalt.err (!%p99_p2)
}
   0x8   :  { %s103_s18 = scalar_lea.vmem %s16_s10, 256  ;;  %p108_p4 = scmp.lt.s32.totalorder %s16_s10, %s16_s10 }
   0x9   :  { %p104_p3 = scmp.ne.s32.totalorder %s16_s10, %s103_s18  ;;  %p109_p5 = scmp.lt.s32.totalorder %s103_s18, %s103_s18 }
   0xb   :  { %p110_p6 = por %p109_p5, %p108_p4 }
   0xd   :  { %p111_p7 = pnand %p110_p6, %p104_p3 }
   0xf   :  { %114 = shalt.err (!%p111_p7)
}
  0x10   :  { %18 = dma.hbm_to_vmem [thread:$0]  %s189_s0, 256, %s16_s10, [#allocation3]  }
  0x11   :  { %137 = dma.done.wait [#allocation3], 256  }
  0x12   :  { %138 = vsyncadd [#allocation3], 4294967040  ;;  %v142_v0 = vmov 0   ;;  %vm37_vm0 = vcmask 72704   ;;  %v24_v1 = vld [vmem:[#allocation2] sm:$0xff]  ;;  %v25_v2 = vld [vmem:[#allocation2 + $0x8] sm:$0xff]  ;;  %v27_v6 = vlaneseq }
  0x13   :  { %86 = vset.pattern.permute.xlu0 %v142_v0  ;;  %v42_v3 = vsel %vm37_vm0, %v25_v2, -inf  ;;  %v26_v5 = vld [vmem:[%s190_s1] sm:$0xff]  ;;  %s143_s0 = smov [#allocation5]  }
  0x14   :  { %v43_v4 = vmax.f32 %v24_v1, %v42_v3  ;;  %v28_v12 = vand.u32 127, %v27_v6  ;;  %s74_s1 = sshll.u32 %s143_s0, 4  ;;  %s75_s1 = int_to_ptr.vmem [resolvable:$true] %s74_s1 }
  0x15   :  { %s115_s23 = scalar_lea.vmem %s75_s1, 128  ;;  %p120_p9 = scmp.lt.s32.totalorder %s75_s1, %s75_s1 }
  0x16   :  { %44 = vmax.xlane.f32.xlu0 %v43_v4  ;;  %v29_v13 = vadd.s32 128, %v28_v12  ;;  %p116_p8 = scmp.ne.s32.totalorder %s75_s1, %s115_s23  ;;  %p121_p10 = scmp.lt.s32.totalorder %s115_s23, %s115_s23 }
  0x18   :  { %p122_p11 = por %p121_p10, %p120_p9 }
  0x1a   :  { %p123_p12 = pnand %p122_p11, %p116_p8 }
  0x2c   :  { %31 = vperm.xlu0 %86, %v26_v5  }
  0xa3   :  { %v45_v7 = vpop.xlane.xlu0 %44 }
  0xa4   :  { %v46_v8 = vsub.f32 %v24_v1, %v45_v7  ;;  %v47_v9 = vsub.f32 %v25_v2, %v45_v7 }
  0xa6   :  { %v48_v10 = vmul.f32 1.442695, %v46_v8  ;;  %v50_v11 = vmul.f32 1.442695, %v47_v9 }
  0xa8   :  { %87 = vpow2.f32 %v48_v10 }
  0xa9   :  { %89 = vpow2.f32 %v50_v11 }
  0xab   :  { %v32_v14 = vpop.permute.xlu0 %31 }
  0xac   :  { %vm34_vm1 = vcmp.eq.s32.totalorder %v29_v13, %v32_v14  ;;  %vm33_vm2 = vcmp.eq.s32.totalorder %v28_v12, %v32_v14 }
  0xad   :  { %v36_v15 = vsel %vm34_vm1, %v25_v2, 0.0  ;;  %v35_v19 = vsel %vm33_vm2, %v24_v1, 0.0 }
  0xae   :  { %v38_v20 = vsel %vm37_vm0, %v36_v15, 0.0 }
  0xaf   :  { %v39_v22 = vadd.f32 %v38_v20, %v35_v19 }
  0xb2   :  { %v88_v16 = vpop.eup %87 }
  0xb3   :  { %v90_v17 = vpop.eup %89 }
  0xb4   :  { %v52_v18 = vsel %vm37_vm0, %v90_v17, 0.0 }
  0xb5   :  { %v53_v21 = vadd.f32 %v88_v16, %v52_v18 }
  0xb7   :  { %54 = vadd.xlane.f32.xlu1 %v53_v21 }
  0xbb   :  { %40 = vadd.xlane.f32.xlu1 %v39_v22 }
 0x144   :  { %v55_v23 = vpop.xlane.xlu1 %54 }
 0x145   :  { %91 = vlog2.f32 %v55_v23 }
 0x148   :  { %v41_v27 = vpop.xlane.xlu1 %40 }
 0x14f   :  { %v92_v24 = vpop.eup %91 }
 0x150   :  { %v57_v25 = vmul.f32 0.6931472, %v92_v24 }
 0x152   :  { %v58_v26 = vadd.f32 %v57_v25, %v45_v7 }
 0x154   :  { %v59_v28 = vadd.f32 1e-12, %v58_v26 }
 0x156   :  { %v60_v29 = vsub.f32 %v59_v28, %v41_v27 }
 0x158   :  { %v61_v30 = vrot.slane %v60_v29, 4 }
 0x15a   :  { %v62_v31 = vadd.f32 %v61_v30, %v60_v29 }
 0x15c   :  { %v63_v32 = vrot.slane %v62_v31, 2 }
 0x15e   :  { %v64_v33 = vadd.f32 %v63_v32, %v62_v31 }
 0x160   :  { %v65_v34 = vrot.slane %v64_v33, 1 }
 0x162   :  { %v66_v35 = vadd.f32 %v65_v34, %v64_v33 }
 0x164   :  { %67 = vst [vmem:[#allocation5] sm:$0xff] %v66_v35 }
 0x165   :  { %126 = shalt.err (!%p123_p12)
}
 0x166   :  { %s127_s26 = scalar_lea.hbm %s191_s2, 128 }
 0x167   :  { %p128_p13 = scmp.ne.s32.totalorder %s191_s2, %s127_s26  ;;  %p131_p0 = scmp.lt.u32.totalorder %s127_s26, %s191_s2 }
 0x169   :  { %p133_p1 = pnand %p131_p0, %p128_p13 }
 0x16b   :  { %136 = shalt.err (!%p133_p1)
}
 0x16c   :  { %77 = dma.vmem_to_hbm [thread:$0]  %s75_s1, 128, %s191_s2, [#allocation4]  }
 0x16d   :  { %139 = dma.done.wait [#allocation4], 128  }
 0x16e   :  { %140 = vsyncadd [#allocation4], 4294967168 }
 0x16f   :  { %81 = vsyncpa [#allocation3], 1 }
 0x170   :  { %82 = vsyncpa [#allocation4], 1 }

</bundles_post_ra>
